<compile_context>
chip_gen: v7x
topology: tpu7x:2x2x1
jax: 0.10.0
libtpu: 0.0.40
codegen_flags: <defaults>
</compile_context>

<pallas_src>
import math

import jax
import jax.numpy as jnp
from jax.experimental import pallas as pl
from jax.experimental.pallas import tpu as pltpu

HIDDEN = 1024  # fixed by the module definition


def _round_up(x, m):
    return (x + m - 1) // m * m


def _cdiv(a, b):
    return -(-a // b)


# -------------------------- kernel bodies -----------------------------------

def _mlp_single_kernel(x_ref, w1_ref, b1_ref, w2_ref, b2_ref, out_ref):
    """One batch tile, full dense2 output width (normal case for 2*n*ns)."""
    h = jnp.dot(x_ref[...], w1_ref[...], preferred_element_type=jnp.float32)
    h = jnp.maximum(h + b1_ref[...], 0.0)
    y = jnp.dot(h.astype(w2_ref.dtype), w2_ref[...],
                preferred_element_type=jnp.float32)
    out_ref[...] = (y + b2_ref[...]).astype(out_ref.dtype)


def _mlp_tiled_kernel(x_ref, w1_ref, b1_ref, w2_ref, b2_ref, out_ref, h_ref):
    """Large-output fallback: hidden activation cached once per batch tile in
    VMEM scratch (compute dtype), W2 streamed in (HIDDEN, tn) column blocks.
    Relies on the j axis being 'arbitrary' (sequential) for the j==0 init."""
    @pl.when(pl.program_id(1) == 0)
    def _():
        h = jnp.dot(x_ref[...], w1_ref[...], preferred_element_type=jnp.float32)
        h_ref[...] = jnp.maximum(h + b1_ref[...], 0.0).astype(h_ref.dtype)

    y = jnp.dot(h_ref[...], w2_ref[...], preferred_element_type=jnp.float32)
    out_ref[...] = (y + b2_ref[...]).astype(out_ref.dtype)


# -------------------------- host-side wrapper --------------------------------

def mlp_forward_pallas(x, w1, b1, w2, b2, *, compute_dtype=None,
                       max_single_tn=2048):
    """x: (B, dim_in); w1: (dim_in, 1024); b1: (1024,); w2: (1024, O);
    b2: (O,)  ->  (B, O) float32.

    compute_dtype defaults to the weight dtype (persist bf16 weights for the
    v6e/v7x MXU fast path; f32 weights give the PyTorch-matching path)."""
    B, dim_in = x.shape
    H, O = w2.shape
    assert H == HIDDEN and w1.shape == (dim_in, HIDDEN)
    assert b1.shape == (HIDDEN,) and b2.shape == (O,)

    if compute_dtype is None:
        compute_dtype = w1.dtype
    compute_dtype = jnp.dtype(compute_dtype)
    itemsize = compute_dtype.itemsize

    # ---- batch tiling: minimal padding, multi-tile only for large B --------
    B_pad = _round_up(max(B, 1), 8)
    if B_pad <= 512:
        tm = B_pad                                   # single batch tile
    else:
        n_bt = _cdiv(B_pad, 256)                     # ~256-row tiles
        tm = _round_up(_cdiv(B_pad, n_bt), 8)
        B_pad = _round_up(B_pad, tm)                 # at most a few dead rows

    # ---- dense2 output tiling: single full-width tile whenever possible ----
    O_pad = _round_up(O, 128)                        # lane-dense stores
    if O_pad <= max_single_tn:
        tn = O_pad
    else:
        tn = _round_up(min(1024, max_single_tn), 128)
        O_pad = _round_up(O_pad, tn)
    nj = O_pad // tn

    # ---- pad / cast inputs (no-op casts are removed by XLA) -----------------
    x_p = x if B_pad == B else jnp.pad(x, ((0, B_pad - B), (0, 0)))
    w2_p = w2 if O_pad == O else jnp.pad(w2, ((0, 0), (0, O_pad - O)))
    b2_p = b2 if O_pad == O else jnp.pad(b2, (0, O_pad - O))

    x_p = x_p.astype(compute_dtype)
    w1_c = w1.astype(compute_dtype)
    w2_p = w2_p.astype(compute_dtype)
    b1_2d = b1.reshape(1, HIDDEN).astype(jnp.float32)
    b2_2d = b2_p.reshape(1, O_pad).astype(jnp.float32)

    # ---- VMEM budget: actual footprint + headroom, never the full 64 MiB ---
    block_bytes = (
        2 * tm * max(dim_in, 128) * itemsize          # x tile (double-buffered)
        + 2 * dim_in * HIDDEN * itemsize              # W1 (resident)
        + 2 * HIDDEN * 4                              # b1
        + 2 * HIDDEN * tn * itemsize                  # W2 block
        + 2 * tn * 4                                  # b2 block
        + 2 * tm * tn * 4                             # output tile
        + (tm * HIDDEN * itemsize if nj > 1 else 0)   # hidden scratch
    )
    vmem_limit = min(max(int(block_bytes * 1.5) + (4 << 20), 16 << 20), 48 << 20)

    flops = 2 * B_pad * dim_in * HIDDEN + 2 * B_pad * HIDDEN * O_pad
    bytes_accessed = (
        x_p.size * itemsize + w1_c.size * itemsize + w2_p.size * itemsize
        + b1_2d.size * 4 + b2_2d.size * 4 + B_pad * O_pad * 4)
    cost = pl.CostEstimate(flops=flops, transcendentals=0,
                           bytes_accessed=bytes_accessed)

    if nj == 1:
        # Normal case: straight-line body, 1-D batch grid ("parallel" so the
        # second v7x TensorCore can take batch tiles when there are >= 2).
        out = pl.pallas_call(
            _mlp_single_kernel,
            out_shape=jax.ShapeDtypeStruct((B_pad, O_pad), jnp.float32),
            grid=(B_pad // tm,),
            in_specs=[
                pl.BlockSpec((tm, dim_in), lambda i: (i, 0)),      # x batch tile
                pl.BlockSpec((dim_in, HIDDEN), lambda i: (0, 0)),  # W1 (resident)
                pl.BlockSpec((1, HIDDEN), lambda i: (0, 0)),       # b1
                pl.BlockSpec((HIDDEN, O_pad), lambda i: (0, 0)),   # W2 (resident)
                pl.BlockSpec((1, O_pad), lambda i: (0, 0)),        # b2
            ],
            out_specs=pl.BlockSpec((tm, O_pad), lambda i: (i, 0)),
            compiler_params=pltpu.CompilerParams(
                dimension_semantics=("parallel",),
                vmem_limit_bytes=vmem_limit),
            cost_estimate=cost,
        )(x_p, w1_c, b1_2d, w2_p, b2_2d)
    else:
        # Large-output fallback: cached hidden activation + streamed W2 blocks.
        out = pl.pallas_call(
            _mlp_tiled_kernel,
            out_shape=jax.ShapeDtypeStruct((B_pad, O_pad), jnp.float32),
            grid=(B_pad // tm, nj),
            in_specs=[
                pl.BlockSpec((tm, dim_in), lambda i, j: (i, 0)),      # x batch tile
                pl.BlockSpec((dim_in, HIDDEN), lambda i, j: (0, 0)),  # W1 (resident)
                pl.BlockSpec((1, HIDDEN), lambda i, j: (0, 0)),       # b1
                pl.BlockSpec((HIDDEN, tn), lambda i, j: (0, j)),      # W2 column block
                pl.BlockSpec((1, tn), lambda i, j: (0, j)),           # b2 column block
            ],
            out_specs=pl.BlockSpec((tm, tn), lambda i, j: (i, j)),
            scratch_shapes=[pltpu.VMEM((tm, HIDDEN), compute_dtype)],
            compiler_params=pltpu.CompilerParams(
                dimension_semantics=("parallel", "arbitrary"),
                vmem_limit_bytes=vmem_limit),
            cost_estimate=cost,
        )(x_p, w1_c, b1_2d, w2_p, b2_2d)

    return out[:B, :O]


def mlp_layers_forward(x, params, n, ns, **kwargs):
    """Full MLPLayers.forward: returns complex64 array of shape (-1, n, ns)."""
    w1, b1, w2, b2 = params
    y = mlp_forward_pallas(x, w1, b1, w2, b2, **kwargs)   # (B, 2*n*ns) f32
    # TODO(synk): complex dtypes are unsupported inside Pallas TPU kernels; the
    # real/imag pairing + reshape stays in plain JAX (pure layout glue).
    x_real = y[:, : n * ns]
    x_imag = y[:, n * ns: 2 * n * ns]
    return jax.lax.complex(x_real, x_imag).reshape(-1, n, ns)


def init_params(key, dim_in, n, ns, dtype=jnp.float32):
    """nn.Linear-style uniform init.  Pass dtype=jnp.bfloat16 to persist bf16
    weight copies (v6e/v7x fast path) instead of casting every forward."""
    out_dim = n * ns * 2
    k1, k2, k3, k4 = jax.random.split(key, 4)
    bound1 = 1.0 / math.sqrt(dim_in)
    bound2 = 1.0 / math.sqrt(HIDDEN)
    w1 = jax.random.uniform(k1, (dim_in, HIDDEN), jnp.float32, -bound1, bound1)
    b1 = jax.random.uniform(k2, (HIDDEN,), jnp.float32, -bound1, bound1)
    w2 = jax.random.uniform(k3, (HIDDEN, out_dim), jnp.float32, -bound2, bound2)
    b2 = jax.random.uniform(k4, (out_dim,), jnp.float32, -bound2, bound2)
    return w1.astype(dtype), b1, w2.astype(dtype), b2


def _jax_reference(x, params, n, ns):
    w1, b1, w2, b2 = params
    h = jnp.maximum(x.astype(jnp.float32) @ w1.astype(jnp.float32) + b1, 0.0)
    y = h @ w2.astype(jnp.float32) + b2
    return jax.lax.complex(y[:, : n * ns], y[:, n * ns: 2 * n * ns]).reshape(-1, n, ns)


if __name__ == "__main__":
    # ---- config 1: small, module-consistent shapes; f32 (PyTorch) path -----
    batch, dim_in, n, ns = 2, 32, 8, 2          # O = 32 -> O_pad = 128, tn = 128
    key = jax.random.PRNGKey(0)
    kx, kp = jax.random.split(key)
    x = jax.random.normal(kx, (batch, dim_in), jnp.float32)
    params = init_params(kp, dim_in, n, ns)
    ref = _jax_reference(x, params, n, ns)

    out = jax.block_until_ready(mlp_layers_forward(x, params, n, ns))
    assert out.shape == (batch, n, ns), out.shape
    assert out.dtype == jnp.complex64, out.dtype
    assert jnp.allclose(out, ref, atol=1e-5, rtol=1e-5)

    # ---- persisted-bf16 weights (v6e/v7x fast path, no per-call weight cast)
    w1f, b1f, w2f, b2f = params
    params_bf16 = (w1f.astype(jnp.bfloat16), b1f, w2f.astype(jnp.bfloat16), b2f)
    out_bf16 = jax.block_until_ready(mlp_layers_forward(x, params_bf16, n, ns))
    assert out_bf16.shape == (batch, n, ns)
    assert jnp.allclose(out_bf16, ref, atol=5e-2, rtol=5e-2)

    # ---- config 2: B=300, O=384 -> single batch tile (tm=304, no 41% pad),
    # single full-width column tile (tn=384), straight-line kernel -----------
    b2_, d2_, n2_, ns2_ = 300, 48, 96, 2
    k2x, k2p = jax.random.split(jax.random.PRNGKey(1))
    x2 = jax.random.normal(k2x, (b2_, d2_), jnp.float32)
    params2 = init_params(k2p, d2_, n2_, ns2_)
    ref2 = _jax_reference(x2, params2, n2_, ns2_)
    out2 = jax.block_until_ready(mlp_layers_forward(x2, params2, n2_, ns2_))
    assert out2.shape == (b2_, n2_, ns2_), out2.shape
    assert jnp.allclose(out2, ref2, atol=1e-4, rtol=1e-4)

    # ---- config 3: force the large-output fallback (multi batch tile +
    # streamed W2 column tiles + cached hidden scratch) at small shapes ------
    b3_, d3_, n3_, ns3_ = 600, 48, 96, 2        # tm=200 x3 tiles, tn=128 x3 tiles
    k3x, k3p = jax.random.split(jax.random.PRNGKey(2))
    x3 = jax.random.normal(k3x, (b3_, d3_), jnp.float32)
    params3 = init_params(k3p, d3_, n3_, ns3_)
    ref3 = _jax_reference(x3, params3, n3_, ns3_)
    out3 = jax.block_until_ready(
        mlp_layers_forward(x3, params3, n3_, ns3_, max_single_tn=128))
    assert out3.shape == (b3_, n3_, ns3_), out3.shape
    assert jnp.allclose(out3, ref3, atol=1e-4, rtol=1e-4)

    print("KERNEL_OK")
</pallas_src>

<mosaic_0001>
module attributes {stable_mosaic.version = 11 : i64} {
  func.func @_mlp_single_kernel(%arg0: i32, %arg1: memref<8x32xf32, #tpu.memory_space<vmem>>, %arg2: memref<32x1024xf32, #tpu.memory_space<vmem>>, %arg3: memref<1x1024xf32, #tpu.memory_space<vmem>>, %arg4: memref<1024x128xf32, #tpu.memory_space<vmem>>, %arg5: memref<1x128xf32, #tpu.memory_space<vmem>>, %arg6: memref<8x128xf32, #tpu.memory_space<vmem>>) attributes {dimension_semantics = [#tpu.dimension_semantics<parallel>], iteration_bounds = array<i64: 1>, scalar_prefetch = 0 : i64, scratch_operands = 0 : i64, tpu.core_type = #tpu.core_type<tc>, window_params = [{transform_indices = @transform_0, window_bounds = array<i64: 8, 32>}, {pipeline_mode = #tpu.pipeline_mode<synchronous>, transform_indices = @transform_1, window_bounds = array<i64: 32, 1024>}, {pipeline_mode = #tpu.pipeline_mode<synchronous>, transform_indices = @transform_2, window_bounds = array<i64: 1, 1024>}, {pipeline_mode = #tpu.pipeline_mode<synchronous>, transform_indices = @transform_3, window_bounds = array<i64: 1024, 128>}, {pipeline_mode = #tpu.pipeline_mode<synchronous>, transform_indices = @transform_4, window_bounds = array<i64: 1, 128>}, {transform_indices = @transform_5, window_bounds = array<i64: 8, 128>}]} {
    %c0 = arith.constant 0 : index
    %c0_0 = arith.constant 0 : index
    %0 = vector.load %arg1[%c0, %c0_0] : memref<8x32xf32, #tpu.memory_space<vmem>>, vector<8x32xf32>
    %c0_1 = arith.constant 0 : index
    %c0_2 = arith.constant 0 : index
    %1 = vector.load %arg2[%c0_1, %c0_2] : memref<32x1024xf32, #tpu.memory_space<vmem>>, vector<32x1024xf32>
    %cst = arith.constant dense<0.000000e+00> : vector<8x1024xf32>
    %2 = tpu.matmul %0, %1, %cst {dimension_numbers = #tpu.dot_dimension_numbers<[1], [0], [0], [1], [0, 0, 1, 1], [], []>} : vector<8x32xf32>, vector<32x1024xf32>, vector<8x1024xf32> -> vector<8x1024xf32>
    %c0_3 = arith.constant 0 : index
    %c0_4 = arith.constant 0 : index
    %3 = vector.load %arg3[%c0_3, %c0_4] : memref<1x1024xf32, #tpu.memory_space<vmem>>, vector<1x1024xf32>
    %4 = vector.broadcast %3 : vector<1x1024xf32> to vector<8x1024xf32>
    %5 = arith.addf %2, %4 : vector<8x1024xf32>
    %cst_5 = arith.constant 0.000000e+00 : f32
    %6 = vector.broadcast %cst_5 : f32 to vector<8x1024xf32>
    %7 = arith.maximumf %5, %6 : vector<8x1024xf32>
    %c0_6 = arith.constant 0 : index
    %c0_7 = arith.constant 0 : index
    %8 = vector.load %arg4[%c0_6, %c0_7] : memref<1024x128xf32, #tpu.memory_space<vmem>>, vector<1024x128xf32>
    %cst_8 = arith.constant dense<0.000000e+00> : vector<8x128xf32>
    %9 = tpu.matmul %7, %8, %cst_8 {dimension_numbers = #tpu.dot_dimension_numbers<[1], [0], [0], [1], [0, 0, 1, 1], [], []>} : vector<8x1024xf32>, vector<1024x128xf32>, vector<8x128xf32> -> vector<8x128xf32>
    %c0_9 = arith.constant 0 : index
    %c0_10 = arith.constant 0 : index
    %10 = vector.load %arg5[%c0_9, %c0_10] : memref<1x128xf32, #tpu.memory_space<vmem>>, vector<1x128xf32>
    %11 = vector.broadcast %10 : vector<1x128xf32> to vector<8x128xf32>
    %12 = arith.addf %9, %11 : vector<8x128xf32>
    %c0_11 = arith.constant 0 : index
    %c0_12 = arith.constant 0 : index
    %13 = vector.load %arg6[%c0_11, %c0_12] : memref<8x128xf32, #tpu.memory_space<vmem>>, vector<8x128xf32>
    tpu.vector_store %arg6[%c0_11, %c0_12], %12 {strides = array<i32>} : memref<8x128xf32, #tpu.memory_space<vmem>>, vector<8x128xf32>,
    return
  }
  func.func @transform_0(%arg0: i32) -> (i32, i32) {
    %c0_i32 = arith.constant 0 : i32
    %c0_i32_0 = arith.constant 0 : i32
    return %arg0, %c0_i32 : i32, i32
  }
  func.func @transform_1(%arg0: i32) -> (i32, i32) {
    %c0_i32 = arith.constant 0 : i32
    %c0_i32_0 = arith.constant 0 : i32
    %c0_i32_1 = arith.constant 0 : i32
    return %c0_i32, %c0_i32_0 : i32, i32
  }
  func.func @transform_2(%arg0: i32) -> (i32, i32) {
    %c0_i32 = arith.constant 0 : i32
    %c0_i32_0 = arith.constant 0 : i32
    %c0_i32_1 = arith.constant 0 : i32
    return %c0_i32, %c0_i32_0 : i32, i32
  }
  func.func @transform_3(%arg0: i32) -> (i32, i32) {
    %c0_i32 = arith.constant 0 : i32
    %c0_i32_0 = arith.constant 0 : i32
    %c0_i32_1 = arith.constant 0 : i32
    return %c0_i32, %c0_i32_0 : i32, i32
  }
  func.func @transform_4(%arg0: i32) -> (i32, i32) {
    %c0_i32 = arith.constant 0 : i32
    %c0_i32_0 = arith.constant 0 : i32
    %c0_i32_1 = arith.constant 0 : i32
    return %c0_i32, %c0_i32_0 : i32, i32
  }
  func.func @transform_5(%arg0: i32) -> (i32, i32) {
    %c0_i32 = arith.constant 0 : i32
    %c0_i32_0 = arith.constant 0 : i32
    return %arg0, %c0_i32 : i32, i32
  }
}

</mosaic_0001>

<bundles_post_ra>
// kernel: tpu_custom_call.1
= control target key start
LH: loop header
LB: loop body
LE: loop exit
PB: predicated region body
PF: predicated region fallthrough
CT: control target
= control target key end

     0   :  { %10 = vsyncpa [#allocation3], 0  ;;  %s1452_s0 = inlined_call_operand.hbm [shape: f32[8,32], index: 0, kind: input, shape index: {}]   ;;  %s1453_s1 = inlined_call_operand.hbm [shape: f32[32,1024], index: 1, kind: input, shape index: {}]   ;;  %s1454_s2 = inlined_call_operand.hbm [shape: f32[1,1024], index: 2, kind: input, shape index: {}]   ;;  %s1455_s3 = inlined_call_operand.hbm [shape: f32[1024,128], index: 3, kind: input, shape index: {}]   ;;  %s1456_s4 = inlined_call_operand.vmem [shape: f32[1,128], index: 4, kind: input, shape index: {}]   ;;  %s1457_s5 = inlined_call_operand.hbm [shape: f32[8,128], index: 5, kind: output, shape index: {}]  }
   0x1   :  { %11 = vsyncpa [#allocation6], 0 }
   0x2   :  { %12 = vsyncpa [#allocation9], 0 }
   0x3   :  { %13 = vsyncpa [#allocation4], 0  ;;  %s1309_s18 = smov [#allocation5]   ;;  %s1191_s22 = scalar_lea.hbm %s1453_s1, 4096 }
   0x4   :  { %s29_s19 = sshll.u32 %s1309_s18, 4  ;;  %p1192_p0 = scmp.ne.s32.totalorder %s1453_s1, %s1191_s22  ;;  %s30_s19 = int_to_ptr.vmem [resolvable:$true] %s29_s19 }
   0x5   :  { %p1195_p1 = scmp.lt.u32.totalorder %s1191_s22, %s1453_s1 }
   0x7   :  { %p1197_p2 = pnand %p1195_p1, %p1192_p0 }
   0x9   :  { %1200 = shalt.err (!%p1197_p2)
}
   0xa   :  { %s1201_s27 = scalar_lea.vmem %s30_s19, 4096  ;;  %p1206_p4 = scmp.lt.s32.totalorder %s30_s19, %s30_s19 }
   0xb   :  { %p1202_p3 = scmp.ne.s32.totalorder %s30_s19, %s1201_s27  ;;  %p1207_p5 = scmp.lt.s32.totalorder %s1201_s27, %s1201_s27 }
   0xd   :  { %p1208_p6 = por %p1207_p5, %p1206_p4 }
   0xf   :  { %p1209_p7 = pnand %p1208_p6, %p1202_p3 }
  0x11   :  { %1212 = shalt.err (!%p1209_p7)
}
  0x12   :  { %s1310_s28 = smov 1024   ;;  %s1311_s29 = smov 64  }
  0x13   :  { %35 = dma.hbm_to_vmem [thread:$0]  %s1453_s1, 4096, %s30_s19, [#allocation6], %s1310_s28, %s1310_s28, %s1311_s29  }
  0x14   :  { %s1312_s7 = smov [#allocation2]   ;;  %s1313_s9 = smov [#allocation7]  }
  0x15   :  { %s20_s8 = sshll.u32 %s1312_s7, 4  ;;  %s42_s10 = sshll.u32 %s1313_s9, 4  ;;  %s21_s8 = int_to_ptr.vmem [resolvable:$true] %s20_s8  ;;  %s43_s10 = int_to_ptr.vmem [resolvable:$true] %s42_s10 }
  0x16   :  { %s1213_s13 = scalar_lea.hbm %s1452_s0, 128 }
  0x17   :  { %p1214_p8 = scmp.ne.s32.totalorder %s1452_s0, %s1213_s13  ;;  %p1217_p9 = scmp.lt.u32.totalorder %s1213_s13, %s1452_s0 }
  0x19   :  { %p1219_p10 = pnand %p1217_p9, %p1214_p8 }
  0x1b   :  { %1222 = shalt.err (!%p1219_p10)
}
  0x1c   :  { %s1223_s1 = scalar_lea.vmem %s21_s8, 128  ;;  %p1228_p12 = scmp.lt.s32.totalorder %s21_s8, %s21_s8 }
  0x1d   :  { %p1224_p11 = scmp.ne.s32.totalorder %s21_s8, %s1223_s1  ;;  %p1229_p13 = scmp.lt.s32.totalorder %s1223_s1, %s1223_s1 }
  0x1f   :  { %p1230_p0 = por %p1229_p13, %p1228_p12 }
  0x21   :  { %p1231_p1 = pnand %p1230_p0, %p1224_p11 }
  0x23   :  { %1234 = shalt.err (!%p1231_p1)
}
  0x24   :  { %23 = dma.hbm_to_vmem [thread:$0]  %s1452_s0, 128, %s21_s8, [#allocation3]  }
  0x25   :  { %s1235_s22 = scalar_lea.hbm %s1454_s2, 128 }
  0x26   :  { %p1236_p2 = scmp.ne.s32.totalorder %s1454_s2, %s1235_s22  ;;  %p1239_p3 = scmp.lt.u32.totalorder %s1235_s22, %s1454_s2 }
  0x28   :  { %p1241_p4 = pnand %p1239_p3, %p1236_p2 }
  0x2a   :  { %1244 = shalt.err (!%p1241_p4)
}
  0x2b   :  { %s1245_s27 = scalar_lea.vmem %s43_s10, 128  ;;  %p1250_p6 = scmp.lt.s32.totalorder %s43_s10, %s43_s10 }
  0x2c   :  { %p1246_p5 = scmp.ne.s32.totalorder %s43_s10, %s1245_s27  ;;  %p1251_p7 = scmp.lt.s32.totalorder %s1245_s27, %s1245_s27 }
  0x2e   :  { %p1252_p8 = por %p1251_p7, %p1250_p6 }
  0x30   :  { %p1253_p9 = pnand %p1252_p8, %p1246_p5 }
  0x32   :  { %1256 = shalt.err (!%p1253_p9)
}
  0x33   :  { %45 = dma.hbm_to_vmem [thread:$0]  %s1454_s2, 128, %s43_s10, [#allocation6]  }
  0x34   :  { %s1314_s29 = smov [#allocation8]   ;;  %s1257_s8 = scalar_lea.hbm %s1455_s3, 16384 }
  0x35   :  { %s51_s30 = sshll.u32 %s1314_s29, 4  ;;  %p1258_p10 = scmp.ne.s32.totalorder %s1455_s3, %s1257_s8  ;;  %s52_s30 = int_to_ptr.vmem [resolvable:$true] %s51_s30 }
  0x36   :  { %p1261_p11 = scmp.lt.u32.totalorder %s1257_s8, %s1455_s3 }
  0x38   :  { %p1263_p12 = pnand %p1261_p11, %p1258_p10 }
  0x3a   :  { %1266 = shalt.err (!%p1263_p12)
}
  0x3b   :  { %s1267_s14 = scalar_lea.vmem %s52_s30, 16384  ;;  %p1272_p0 = scmp.lt.s32.totalorder %s52_s30, %s52_s30 }
  0x3c   :  { %p1268_p13 = scmp.ne.s32.totalorder %s52_s30, %s1267_s14  ;;  %p1273_p1 = scmp.lt.s32.totalorder %s1267_s14, %s1267_s14 }
  0x3e   :  { %p1274_p2 = por %p1273_p1, %p1272_p0 }
  0x40   :  { %p1275_p3 = pnand %p1274_p2, %p1268_p13 }
  0x42   :  { %1278 = shalt.err (!%p1275_p3)
}
  0x43   :  { %s1315_s2 = smov 128   ;;  %s1316_s10 = smov 8  }
  0x44   :  { %57 = dma.hbm_to_vmem [thread:$0]  %s1455_s3, 16384, %s52_s30, [#allocation9], %s1315_s2, %s1315_s2, %s1316_s10  }
  0x45   :  { %1301 = dma.done.wait [#allocation3], 128  }
  0x46   :  { %1302 = vsyncadd [#allocation3], 4294967168 }
  0x47   :  { %1303 = dma.done.wait [#allocation6], 4224  }
  0x48   :  { %1304 = vsyncadd [#allocation6], 4294963072 }
  0x49   :  { %1305 = dma.done.wait [#allocation9], 16384  }
  0x4a   :  { %1306 = vsyncadd [#allocation9], 4294950912  ;;  %v1317_v0 = vmov 0.0   ;;  %v74_v1 = vld [vmem:[#allocation5 + $0x8] sm:$0xff]  ;;  %v76_v3 = vld [vmem:[#allocation5 + $0x18] sm:$0xff]  ;;  %vm147_vm0 = vcmask 261120  }
  0x4b   :  { %215 = vmatprep.mubr.f32.mxu0 %v1317_v0  ;;  %286 = vmatprep.mubr.f32.mxu1 %v1317_v0  ;;  %v82_v2 = vld [vmem:[#allocation5 + $0x48] sm:$0xff]  ;;  %v84_v5 = vld [vmem:[#allocation5 + $0x58] sm:$0xff]  ;;  %v73_v6 = vld [vmem:[#allocation5] sm:$0xff]  ;;  %s1318_s1 = smov [#allocation10]  }
  0x4c   :  { %v1021_v4 = vpack.c.bf16 %v82_v2, %v74_v1  ;;  %v81_v7 = vld [vmem:[#allocation5 + $0x40] sm:$0xff]  ;;  %v1029_v8 = vpack.c.bf16 %v84_v5, %v76_v3  ;;  %v75_v10 = vld [vmem:[#allocation5 + $0x10] sm:$0xff]  ;;  %v90_v12 = vld [vmem:[#allocation5 + $0x88] sm:$0xff]  ;;  %s865_s18 = sshll.u32 %s1318_s1, 4  ;;  %s866_s18 = int_to_ptr.vmem [resolvable:$true] %s865_s18 }
  0x4d   :  { %v1023_v9 = vpack.c.bf16 %v81_v7, %v73_v6  ;;  %v83_v11 = vld [vmem:[#allocation5 + $0x50] sm:$0xff]  ;;  %v98_v14 = vld [vmem:[#allocation5 + $0xc8] sm:$0xff]  ;;  %v92_v15 = vld [vmem:[#allocation5 + $0x98] sm:$0xff]  ;;  %s1279_s19 = scalar_lea.vmem %s866_s18, 128  ;;  %p1284_p5 = scmp.lt.s32.totalorder %s866_s18, %s866_s18 }
  0x4e   :  { %1022 = vmatprep.subr.bf16.mxu0 %v1021_v4  ;;  %v1031_v13 = vpack.c.bf16 %v83_v11, %v75_v10  ;;  %v100_v16 = vld [vmem:[#allocation5 + $0xd8] sm:$0xff]  ;;  %1030 = vmatprep.subr.bf16.mxu1 %v1029_v8  ;;  %v1025_v17 = vpack.c.bf16 %v98_v14, %v90_v12  ;;  %v89_v19 = vld [vmem:[#allocation5 + $0x80] sm:$0xff]  ;;  %v91_v21 = vld [vmem:[#allocation5 + $0x90] sm:$0xff]  ;;  %p1280_p4 = scmp.ne.s32.totalorder %s866_s18, %s1279_s19  ;;  %p1285_p6 = scmp.lt.s32.totalorder %s1279_s19, %s1279_s19 }
  0x4f   :  { %1024 = vmatpush1.bf16.msra.mxu0 %v1023_v9  ;;  %v1033_v18 = vpack.c.bf16 %v100_v16, %v92_v15  ;;  %v97_v20 = vld [vmem:[#allocation5 + $0xc0] sm:$0xff]  ;;  %v99_v23 = vld [vmem:[#allocation5 + $0xd0] sm:$0xff]  ;;  %v78_v24 = vld [vmem:[#allocation5 + $0x28] sm:$0xff] }
  0x50   :  { %1032 = vmatpush1.bf16.msra.mxu1 %v1031_v13  ;;  %v1027_v22 = vpack.c.bf16 %v97_v20, %v89_v19  ;;  %1026 = vmatprep.subr.bf16.mxu0 %v1025_v17  ;;  %v1035_v25 = vpack.c.bf16 %v99_v23, %v91_v21  ;;  %v1399_v26 = vld [vmem:[#allocation2] sm:$0xff]  ;;  %v86_v27 = vld [vmem:[#allocation5 + $0x68] sm:$0xff]  ;;  %v77_v28 = vld [vmem:[#allocation5 + $0x20] sm:$0xff]  ;;  %p1286_p7 = por %p1285_p6, %p1284_p5 }
  0x51   :  { %1034 = vmatprep.subr.bf16.mxu1 %v1033_v18  ;;  %v85_v29 = vld [vmem:[#allocation5 + $0x60] sm:$0xff]  ;;  %v1037_v30 = vpack.c.bf16 %v86_v27, %v78_v24  ;;  %v80_v31 = vld [vmem:[#allocation5 + $0x38] sm:$0xff]  ;;  %v79_v33 = vld [vmem:[#allocation5 + $0x30] sm:$0xff] }
  0x52   :  { %v88_v32 = vld [vmem:[#allocation5 + $0x78] sm:$0xff]  ;;  %v1039_v34 = vpack.c.bf16 %v85_v29, %v77_v28  ;;  %v87_v36 = vld [vmem:[#allocation5 + $0x70] sm:$0xff]  ;;  %v94_v37 = vld [vmem:[#allocation5 + $0xa8] sm:$0xff]  ;;  %p1287_p8 = pnand %p1286_p7, %p1280_p4 }
  0x53   :  { %1028 = vmatpush1.bf16.msra.mxu0 %v1027_v22  ;;  %v1045_v35 = vpack.c.bf16 %v88_v32, %v80_v31  ;;  %v102_v38 = vld [vmem:[#allocation5 + $0xe8] sm:$0xff]  ;;  %v1047_v39 = vpack.c.bf16 %v87_v36, %v79_v33  ;;  %v93_v41 = vld [vmem:[#allocation5 + $0xa0] sm:$0xff]  ;;  %v96_v43 = vld [vmem:[#allocation5 + $0xb8] sm:$0xff] }
  0x54   :  { %1036 = vmatpush1.bf16.msra.mxu1 %v1035_v25  ;;  %1038 = vmatprep.subr.bf16.mxu0 %v1037_v30  ;;  %v1041_v40 = vpack.c.bf16 %v102_v38, %v94_v37  ;;  %v101_v42 = vld [vmem:[#allocation5 + $0xe0] sm:$0xff]  ;;  %v104_v44 = vld [vmem:[#allocation5 + $0xf8] sm:$0xff]  ;;  %v95_v45 = vld [vmem:[#allocation5 + $0xb0] sm:$0xff] }
  0x55   :  { %1046 = vmatprep.subr.bf16.mxu1 %v1045_v35  ;;  %v103_v46 = vld [vmem:[#allocation5 + $0xf0] sm:$0xff]  ;;  %v1049_v47 = vpack.c.bf16 %v104_v44, %v96_v43  ;;  %v459_v48 = vld [vmem:[#allocation8 + $0x80] sm:$0xff]  ;;  %v1043_v51 = vpack.c.bf16 %v101_v42, %v93_v41  ;;  %v461_v60 = vld [vmem:[#allocation8 + $0x90] sm:$0xff] }
  0x56   :  { %876 = vmatmul.mubr.msk.f32.vlgmr.msra.gmra.mrb[0].mxu0 %vm147_vm0, %v1399_v26  ;;  %v460_v49 = vld [vmem:[#allocation8 + $0x88] sm:$0xff]  ;;  %v491_v50 = vld [vmem:[#allocation8 + $0x180] sm:$0xff]  ;;  %v1051_v53 = vpack.c.bf16 %v103_v46, %v95_v45  ;;  %v462_v61 = vld [vmem:[#allocation8 + $0x98] sm:$0xff] }
  0x57   :  { %877 = vmatmul.mubr.msk.f32.vlgmr.msra.gmra.mrb[0].mxu1 %vm147_vm0, %v1399_v26  ;;  %1040 = vmatpush1.bf16.msra.mxu0 %v1039_v34  ;;  %v492_v52 = vld [vmem:[#allocation8 + $0x188] sm:$0xff]  ;;  %v1053_v54 = vpack.c.bf16 %v460_v49, %v459_v48  ;;  %v443_v55 = vld [vmem:[#allocation8] sm:$0xff]  ;;  %v493_v62 = vld [vmem:[#allocation8 + $0x190] sm:$0xff]  ;;  %v1057_v3 = vpack.c.bf16 %v462_v61, %v461_v60 }
  0x58   :  { %1048 = vmatpush1.bf16.msra.mxu1 %v1047_v39  ;;  %1042 = vmatprep.subr.bf16.mxu0 %v1041_v40  ;;  %v444_v56 = vld [vmem:[#allocation8 + $0x8] sm:$0xff]  ;;  %v475_v57 = vld [vmem:[#allocation8 + $0x100] sm:$0xff]  ;;  %v1085_v58 = vpack.c.bf16 %v492_v52, %v491_v50  ;;  %v494_v63 = vld [vmem:[#allocation8 + $0x198] sm:$0xff] }
  0x59   :  { %1050 = vmatprep.subr.bf16.mxu1 %v1049_v47  ;;  %357 = vmatprep.mubr.f32.mxu0 %v1317_v0  ;;  %v476_v59 = vld [vmem:[#allocation8 + $0x108] sm:$0xff]  ;;  %v1055_v1 = vpack.c.bf16 %v444_v56, %v443_v55  ;;  %v445_v4 = vld [vmem:[#allocation8 + $0x10] sm:$0xff]  ;;  %v446_v5 = vld [vmem:[#allocation8 + $0x18] sm:$0xff]  ;;  %v1089_v7 = vpack.c.bf16 %v494_v63, %v493_v62 }
  0x5a   :  { %428 = vmatprep.mubr.f32.mxu1 %v1317_v0  ;;  %v1087_v2 = vpack.c.bf16 %v476_v59, %v475_v57  ;;  %v477_v6 = vld [vmem:[#allocation8 + $0x110] sm:$0xff]  ;;  %v478_v8 = vld [vmem:[#allocation8 + $0x118] sm:$0xff]  ;;  %v463_v9 = vld [vmem:[#allocation8 + $0xa0] sm:$0xff]  ;;  %v1059_v12 = vpack.c.bf16 %v446_v5, %v445_v4 }
  0x5b   :  { %1044 = vmatpush1.bf16.msra.mxu0 %v1043_v51  ;;  %v464_v10 = vld [vmem:[#allocation8 + $0xa8] sm:$0xff]  ;;  %v495_v0 = vld [vmem:[#allocation8 + $0x1a0] sm:$0xff]  ;;  %v1091_v13 = vpack.c.bf16 %v478_v8, %v477_v6  ;;  %v465_v20 = vld [vmem:[#allocation8 + $0xb0] sm:$0xff] }
  0x5c   :  { %1052 = vmatpush1.bf16.msra.mxu1 %v1051_v53  ;;  %1054 = vmatprep.subr.bf16.mxu0 %v1053_v54  ;;  %v496_v11 = vld [vmem:[#allocation8 + $0x1a8] sm:$0xff]  ;;  %v1061_v14 = vpack.c.bf16 %v464_v10, %v463_v9  ;;  %v447_v15 = vld [vmem:[#allocation8 + $0x20] sm:$0xff]  ;;  %v466_v21 = vld [vmem:[#allocation8 + $0xb8] sm:$0xff] }
  0x5d   :  { %1086 = vmatprep.subr.bf16.mxu1 %v1085_v58  ;;  %v448_v16 = vld [vmem:[#allocation8 + $0x28] sm:$0xff]  ;;  %v479_v17 = vld [vmem:[#allocation8 + $0x120] sm:$0xff]  ;;  %v1093_v18 = vpack.c.bf16 %v496_v11, %v495_v0  ;;  %v497_v22 = vld [vmem:[#allocation8 + $0x1b0] sm:$0xff] }
  0x5e   :  { %878 = vmatmul.mubr.msk.f32.vlgmr.msra.gmra.mrb[2].mxu0 %vm147_vm0, %v1399_v26  ;;  %v480_v19 = vld [vmem:[#allocation8 + $0x128] sm:$0xff]  ;;  %v498_v23 = vld [vmem:[#allocation8 + $0x1b8] sm:$0xff]  ;;  %v1063_v24 = vpack.c.bf16 %v448_v16, %v447_v15  ;;  %v449_v27 = vld [vmem:[#allocation8 + $0x30] sm:$0xff] }
  0x5f   :  { %879 = vmatmul.mubr.msk.f32.vlgmr.msra.gmra.mrb[2].mxu1 %vm147_vm0, %v1399_v26  ;;  %1056 = vmatpush3.bf16.msra.mxu0 %v1055_v1  ;;  %v1095_v25 = vpack.c.bf16 %v480_v19, %v479_v17  ;;  %v1065_v26 = vpack.c.bf16 %v466_v21, %v465_v20  ;;  %v450_v28 = vld [vmem:[#allocation8 + $0x38] sm:$0xff]  ;;  %v481_v29 = vld [vmem:[#allocation8 + $0x130] sm:$0xff]  ;;  %v1097_v30 = vpack.c.bf16 %v498_v23, %v497_v22  ;;  %v467_v32 = vld [vmem:[#allocation8 + $0xc0] sm:$0xff] }
  0x60   :  { %1088 = vmatpush3.bf16.msra.mxu1 %v1087_v2  ;;  %1058 = vmatprep.subr.bf16.mxu0 %v1057_v3  ;;  %v482_v31 = vld [vmem:[#allocation8 + $0x138] sm:$0xff]  ;;  %v468_v33 = vld [vmem:[#allocation8 + $0xc8] sm:$0xff]  ;;  %v499_v34 = vld [vmem:[#allocation8 + $0x1c0] sm:$0xff]  ;;  %v1067_v36 = vpack.c.bf16 %v450_v28, %v449_v27 }
  0x61   :  { %1090 = vmatprep.subr.bf16.mxu1 %v1089_v7  ;;  %v500_v35 = vld [vmem:[#allocation8 + $0x1c8] sm:$0xff]  ;;  %v1099_v37 = vpack.c.bf16 %v482_v31, %v481_v29  ;;  %v1069_v38 = vpack.c.bf16 %v468_v33, %v467_v32  ;;  %v451_v39 = vld [vmem:[#allocation8 + $0x40] sm:$0xff]  ;;  %v469_v44 = vld [vmem:[#allocation8 + $0xd0] sm:$0xff] }
  0x62   :  { %v452_v40 = vld [vmem:[#allocation8 + $0x48] sm:$0xff]  ;;  %v483_v41 = vld [vmem:[#allocation8 + $0x140] sm:$0xff]  ;;  %v1101_v42 = vpack.c.bf16 %v500_v35, %v499_v34  ;;  %v470_v45 = vld [vmem:[#allocation8 + $0xd8] sm:$0xff] }
  0x63   :  { %1060 = vmatpush3.bf16.msra.mxu0 %v1059_v12  ;;  %v484_v43 = vld [vmem:[#allocation8 + $0x148] sm:$0xff]  ;;  %v501_v46 = vld [vmem:[#allocation8 + $0x1d0] sm:$0xff]  ;;  %v502_v47 = vld [vmem:[#allocation8 + $0x1d8] sm:$0xff]  ;;  %v1071_v48 = vpack.c.bf16 %v452_v40, %v451_v39  ;;  %v1073_v50 = vpack.c.bf16 %v470_v45, %v469_v44 }
  0x64   :  { %1092 = vmatpush3.bf16.msra.mxu1 %v1091_v13  ;;  %1062 = vmatprep.subr.bf16.mxu0 %v1061_v14  ;;  %v1103_v49 = vpack.c.bf16 %v484_v43, %v483_v41  ;;  %v453_v51 = vld [vmem:[#allocation8 + $0x50] sm:$0xff]  ;;  %v454_v52 = vld [vmem:[#allocation8 + $0x58] sm:$0xff]  ;;  %v1105_v54 = vpack.c.bf16 %v502_v47, %v501_v46  ;;  %v471_v56 = vld [vmem:[#allocation8 + $0xe0] sm:$0xff] }
  0x65   :  { %1094 = vmatprep.subr.bf16.mxu1 %v1093_v18  ;;  %v485_v53 = vld [vmem:[#allocation8 + $0x150] sm:$0xff]  ;;  %v486_v55 = vld [vmem:[#allocation8 + $0x158] sm:$0xff]  ;;  %v472_v57 = vld [vmem:[#allocation8 + $0xe8] sm:$0xff]  ;;  %v1075_v60 = vpack.c.bf16 %v454_v52, %v453_v51 }
  0x66   :  { %v503_v58 = vld [vmem:[#allocation8 + $0x1e0] sm:$0xff]  ;;  %v504_v59 = vld [vmem:[#allocation8 + $0x1e8] sm:$0xff]  ;;  %v1107_v61 = vpack.c.bf16 %v486_v55, %v485_v53  ;;  %v1077_v62 = vpack.c.bf16 %v472_v57, %v471_v56  ;;  %v473_v7 = vld [vmem:[#allocation8 + $0xf0] sm:$0xff] }
  0x67   :  { %1064 = vmatpush3.bf16.msra.mxu0 %v1063_v24  ;;  %v455_v63 = vld [vmem:[#allocation8 + $0x60] sm:$0xff]  ;;  %v456_v1 = vld [vmem:[#allocation8 + $0x68] sm:$0xff]  ;;  %v1109_v2 = vpack.c.bf16 %v504_v59, %v503_v58  ;;  %v474_v8 = vld [vmem:[#allocation8 + $0xf8] sm:$0xff]  ;;  %v107_v24 = vlaneseq }
  0x68   :  { %1096 = vmatpush3.bf16.msra.mxu1 %v1095_v25  ;;  %1066 = vmatprep.subr.bf16.mxu0 %v1065_v26  ;;  %v487_v3 = vld [vmem:[#allocation8 + $0x160] sm:$0xff]  ;;  %v488_v4 = vld [vmem:[#allocation8 + $0x168] sm:$0xff]  ;;  %v1079_v5 = vpack.c.bf16 %v456_v1, %v455_v63  ;;  %v505_v9 = vld [vmem:[#allocation8 + $0x1f0] sm:$0xff]  ;;  %v1081_v10 = vpack.c.bf16 %v474_v8, %v473_v7 }
  0x69   :  { %1098 = vmatprep.subr.bf16.mxu1 %v1097_v30  ;;  %v1111_v6 = vpack.c.bf16 %v488_v4, %v487_v3  ;;  %v506_v0 = vld [vmem:[#allocation8 + $0x1f8] sm:$0xff]  ;;  %v457_v11 = vld [vmem:[#allocation8 + $0x70] sm:$0xff]  ;;  %v523_v18 = vld [vmem:[#allocation8 + $0x280] sm:$0xff]  ;;  %v1411_v25 = vshrl.u32 %v107_v24, 7 }
  0x6a   :  { %v458_v12 = vld [vmem:[#allocation8 + $0x78] sm:$0xff]  ;;  %v1113_v13 = vpack.c.bf16 %v506_v0, %v505_v9  ;;  %v489_v15 = vld [vmem:[#allocation8 + $0x170] sm:$0xff]  ;;  %v524_v19 = vld [vmem:[#allocation8 + $0x288] sm:$0xff] }
  0x6b   :  { %1068 = vmatpush3.bf16.msra.mxu0 %v1067_v36  ;;  %v1083_v14 = vpack.c.bf16 %v458_v12, %v457_v11  ;;  %v490_v16 = vld [vmem:[#allocation8 + $0x178] sm:$0xff]  ;;  %v555_v20 = vld [vmem:[#allocation8 + $0x380] sm:$0xff]  ;;  %v1117_v21 = vpack.c.bf16 %v524_v19, %v523_v18  ;;  %v556_v22 = vld [vmem:[#allocation8 + $0x388] sm:$0xff]  ;;  %v109_v26 = vsub.s32 0, %v1411_v25  ;;  %v117_v28 = vsub.s32 2, %v1411_v25 }
  0x6c   :  { %1100 = vmatpush3.bf16.msra.mxu1 %v1099_v37  ;;  %1070 = vmatprep.subr.bf16.mxu0 %v1069_v38  ;;  %v1115_v17 = vpack.c.bf16 %v490_v16, %v489_v15  ;;  %v1149_v23 = vpack.c.bf16 %v556_v22, %v555_v20  ;;  %v1414_v27 = vld [vmem:[#allocation7] sm:$0xff]  ;;  %v113_v29 = vsub.s32 1, %v1411_v25  ;;  %v121_v30 = vsub.s32 3, %v1411_v25  ;;  %v507_v39 = vld [vmem:[#allocation8 + $0x200] sm:$0xff]  ;;  %v508_v40 = vld [vmem:[#allocation8 + $0x208] sm:$0xff] }
  0x6d   :  { %1102 = vmatprep.subr.bf16.mxu1 %v1101_v42  ;;  %v110_v31 = vrot.slane %v1414_v27, %v109_v26  ;;  %v118_v32 = vrot.slane %v1414_v27, %v117_v28  ;;  %v539_v41 = vld [vmem:[#allocation8 + $0x300] sm:$0xff]  ;;  %v540_v45 = vld [vmem:[#allocation8 + $0x308] sm:$0xff]  ;;  %v525_v46 = vld [vmem:[#allocation8 + $0x290] sm:$0xff]  ;;  %v137_v52 = vsub.s32 7, %v1411_v25  ;;  %v1119_v55 = vpack.c.bf16 %v508_v40, %v507_v39 }
  0x6e   :  { %v114_v33 = vrot.slane %v1414_v27, %v113_v29  ;;  %v122_v34 = vrot.slane %v1414_v27, %v121_v30  ;;  %v526_v47 = vld [vmem:[#allocation8 + $0x298] sm:$0xff]  ;;  %v1151_v58 = vpack.c.bf16 %v540_v45, %v539_v41  ;;  %v528_v3 = vld [vmem:[#allocation8 + $0x2a8] sm:$0xff]  ;;  %v511_v11 = vld [vmem:[#allocation8 + $0x220] sm:$0xff] }
  0x6f   :  { %1072 = vmatpush3.bf16.msra.mxu0 %v1071_v48  ;;  %v129_v48 = vsub.s32 5, %v1411_v25  ;;  %v558_v51 = vld [vmem:[#allocation8 + $0x398] sm:$0xff]  ;;  %v1121_v59 = vpack.c.bf16 %v526_v47, %v525_v46  ;;  %v138_v7 = vrot.slane %v1414_v27, %v137_v52  ;;  %v512_v12 = vld [vmem:[#allocation8 + $0x228] sm:$0xff]  ;;  %v529_v18 = vld [vmem:[#allocation8 + $0x2b0] sm:$0xff] }
  0x70   :  { %1104 = vmatpush3.bf16.msra.mxu1 %v1103_v49  ;;  %1074 = vmatprep.subr.bf16.mxu0 %v1073_v50  ;;  %v557_v50 = vld [vmem:[#allocation8 + $0x390] sm:$0xff]  ;;  %v542_v1 = vld [vmem:[#allocation8 + $0x318] sm:$0xff]  ;;  %v1127_v26 = vpack.c.bf16 %v512_v12, %v511_v11  ;;  %v563_v39 = vld [vmem:[#allocation8 + $0x3c0] sm:$0xff] }
  0x71   :  { %1106 = vmatprep.subr.bf16.mxu1 %v1105_v54  ;;  %v1153_v63 = vpack.c.bf16 %v558_v51, %v557_v50  ;;  %v130_v4 = vrot.slane %v1414_v27, %v129_v48  ;;  %v530_v19 = vld [vmem:[#allocation8 + $0x2b8] sm:$0xff]  ;;  %v561_v22 = vld [vmem:[#allocation8 + $0x3b0] sm:$0xff]  ;;  %v564_v40 = vld [vmem:[#allocation8 + $0x3c8] sm:$0xff] }
  0x72   :  { %v1129_v30 = vpack.c.bf16 %v530_v19, %v529_v18  ;;  %v516_v45 = vld [vmem:[#allocation8 + $0x248] sm:$0xff]  ;;  %v547_v46 = vld [vmem:[#allocation8 + $0x340] sm:$0xff]  ;;  %v1165_v47 = vpack.c.bf16 %v564_v40, %v563_v39  ;;  %v534_v50 = vld [vmem:[#allocation8 + $0x2d8] sm:$0xff] }
  0x73   :  { %1076 = vmatpush3.bf16.msra.mxu0 %v1075_v60  ;;  %v509_v60 = vld [vmem:[#allocation8 + $0x210] sm:$0xff]  ;;  %v548_v48 = vld [vmem:[#allocation8 + $0x348] sm:$0xff]  ;;  %v566_v52 = vld [vmem:[#allocation8 + $0x3d8] sm:$0xff] }
  0x74   :  { %1108 = vmatpush3.bf16.msra.mxu1 %v1107_v61  ;;  %1078 = vmatprep.subr.bf16.mxu0 %v1077_v62  ;;  %v510_v61 = vld [vmem:[#allocation8 + $0x218] sm:$0xff]  ;;  %v541_v62 = vld [vmem:[#allocation8 + $0x310] sm:$0xff]  ;;  %v552_v11 = vld [vmem:[#allocation8 + $0x368] sm:$0xff] }
  0x75   :  { %1110 = vmatprep.subr.bf16.mxu1 %v1109_v2  ;;  %v527_v2 = vld [vmem:[#allocation8 + $0x2a0] sm:$0xff]  ;;  %v1123_v8 = vpack.c.bf16 %v510_v61, %v509_v60  ;;  %v565_v51 = vld [vmem:[#allocation8 + $0x3d0] sm:$0xff]  ;;  %v550_v60 = vld [vmem:[#allocation8 + $0x358] sm:$0xff] }
  0x76   :  { %v1125_v0 = vpack.c.bf16 %v528_v3, %v527_v2  ;;  %v535_v61 = vld [vmem:[#allocation8 + $0x2e0] sm:$0xff]  ;;  %v133_v3 = vsub.s32 6, %v1411_v25  ;;  %v537_v12 = vld [vmem:[#allocation8 + $0x2f0] sm:$0xff] }
  0x77   :  { %1080 = vmatpush3.bf16.msra.mxu0 %v1079_v5  ;;  %v559_v5 = vld [vmem:[#allocation8 + $0x3a0] sm:$0xff] }
  0x78   :  { %1112 = vmatpush3.bf16.msra.mxu1 %v1111_v6  ;;  %1082 = vmatprep.subr.bf16.mxu0 %v1081_v10  ;;  %v560_v6 = vld [vmem:[#allocation8 + $0x3a8] sm:$0xff]  ;;  %v1155_v10 = vpack.c.bf16 %v542_v1, %v541_v62 }
  0x79   :  { %1114 = vmatprep.subr.bf16.mxu1 %v1113_v13  ;;  %v543_v13 = vld [vmem:[#allocation8 + $0x320] sm:$0xff]  ;;  %v1157_v16 = vpack.c.bf16 %v560_v6, %v559_v5  ;;  %v536_v62 = vld [vmem:[#allocation8 + $0x2e8] sm:$0xff]  ;;  %v125_v5 = vsub.s32 4, %v1411_v25 }
  0x7a   :  { %v568_v1 = vld [vmem:[#allocation8 + $0x3e8] sm:$0xff]  ;;  %v1141_v6 = vpack.c.bf16 %v536_v62, %v535_v61 }
  0x7b   :  { %1084 = vmatpush3.bf16.msra.mxu0 %v1083_v14  ;;  %v126_v19 = vrot.slane %v1414_v27, %v125_v5 }
  0x7c   :  { %1116 = vmatpush3.bf16.msra.mxu1 %v1115_v17  ;;  %1118 = vmatprep.subr.bf16.mxu0 %v1117_v21  ;;  %v544_v17 = vld [vmem:[#allocation8 + $0x328] sm:$0xff] }
  0x7d   :  { %1150 = vmatprep.subr.bf16.mxu1 %v1149_v23  ;;  %v562_v23 = vld [vmem:[#allocation8 + $0x3b8] sm:$0xff]  ;;  %v1159_v29 = vpack.c.bf16 %v544_v17, %v543_v13  ;;  %v134_v17 = vrot.slane %v1414_v27, %v133_v3 }
  0x7e   :  { %v538_v13 = vld [vmem:[#allocation8 + $0x2f8] sm:$0xff] }
 0x129   :  { %v217_v35 = vpop.f32.mrb[0].mxu0 }
 0x12a   :  { %v218_v36 = vadd.f32 %v217_v35, %v110_v31  ;;  %v288_v37 = vpop.f32.mrb[0].mxu1  ;;  %v219_v38 = vpop.f32.mrb[1].mxu0  ;;  %v513_v31 = vld [vmem:[#allocation8 + $0x230] sm:$0xff]  ;;  %v1161_v35 = vpack.c.bf16 %v562_v23, %v561_v22  ;;  %v522_v22 = vld [vmem:[#allocation8 + $0x278] sm:$0xff] }
 0x12b   :  { %v289_v42 = vadd.f32 %v288_v37, %v118_v32  ;;  %v220_v43 = vadd.f32 %v219_v38, %v114_v33  ;;  %v290_v44 = vpop.f32.mrb[1].mxu1  ;;  %v514_v32 = vld [vmem:[#allocation8 + $0x238] sm:$0xff]  ;;  %v545_v33 = vld [vmem:[#allocation8 + $0x330] sm:$0xff]  ;;  %v531_v37 = vld [vmem:[#allocation8 + $0x2c0] sm:$0xff] }
 0x12c   :  { %v291_v49 = vadd.f32 %v290_v44, %v122_v34  ;;  %v435_v56 = vmax.f32 %v218_v36, 0.0  ;;  %v546_v36 = vld [vmem:[#allocation8 + $0x338] sm:$0xff]  ;;  %v532_v38 = vld [vmem:[#allocation8 + $0x2c8] sm:$0xff]  ;;  %v1131_v41 = vpack.c.bf16 %v514_v32, %v513_v31  ;;  %v515_v44 = vld [vmem:[#allocation8 + $0x240] sm:$0xff] }
 0x12d   :  { %v437_v53 = vmax.f32 %v289_v42, 0.0  ;;  %v436_v54 = vmax.f32 %v220_v43, 0.0  ;;  %v1163_v42 = vpack.c.bf16 %v546_v36, %v545_v33  ;;  %v1133_v43 = vpack.c.bf16 %v532_v38, %v531_v37 }
 0x12e   :  { %v438_v57 = vmax.f32 %v291_v49, 0.0  ;;  %v533_v49 = vld [vmem:[#allocation8 + $0x2d0] sm:$0xff] }
 0x12f   :  { %642 = vmatprep.mubr.f32.mxu0 %v436_v54  ;;  %v1167_v54 = vpack.c.bf16 %v548_v48, %v547_v46 }
 0x130   :  { %712 = vmatprep.mubr.f32.mxu1 %v438_v57  ;;  %643 = vmatmul.mubr.f32.vlgmr.msra.gmra.mrb[4].mxu0 %v435_v56  ;;  %v517_v56 = vld [vmem:[#allocation8 + $0x250] sm:$0xff]  ;;  %v518_v57 = vld [vmem:[#allocation8 + $0x258] sm:$0xff] }
 0x131   :  { %713 = vmatmul.mubr.f32.vlgmr.msra.gmra.mrb[4].mxu1 %v437_v53  ;;  %1120 = vmatpush3.bf16.msra.mxu0 %v1119_v55  ;;  %v1427_v9 = vpop.f32.mrb[2].mxu0  ;;  %v1135_v53 = vpack.c.bf16 %v516_v45, %v515_v44  ;;  %v1137_v55 = vpack.c.bf16 %v534_v50, %v533_v49  ;;  %v1139_v2 = vpack.c.bf16 %v518_v57, %v517_v56 }
 0x132   :  { %1152 = vmatpush3.bf16.msra.mxu1 %v1151_v58  ;;  %1122 = vmatprep.subr.bf16.mxu0 %v1121_v59  ;;  %v361_v14 = vpop.f32.mrb[3].mxu0  ;;  %v1429_v15 = vpop.f32.mrb[2].mxu1  ;;  %v549_v58 = vld [vmem:[#allocation8 + $0x350] sm:$0xff]  ;;  %v1169_v59 = vpack.c.bf16 %v566_v52, %v565_v51 }
 0x133   :  { %1154 = vmatprep.subr.bf16.mxu1 %v1153_v63  ;;  %v362_v20 = vadd.f32 %v361_v14, %v130_v4  ;;  %v432_v21 = vpop.f32.mrb[3].mxu1  ;;  %v567_v63 = vld [vmem:[#allocation8 + $0x3e0] sm:$0xff]  ;;  %v1171_v4 = vpack.c.bf16 %v550_v60, %v549_v58  ;;  %v569_v14 = vld [vmem:[#allocation8 + $0x3f0] sm:$0xff] }
 0x134   :  { %v433_v24 = vadd.f32 %v432_v21, %v138_v7  ;;  %v519_v7 = vld [vmem:[#allocation8 + $0x260] sm:$0xff]  ;;  %v521_v21 = vld [vmem:[#allocation8 + $0x270] sm:$0xff] }
 0x135   :  { %1124 = vmatpush3.bf16.msra.mxu0 %v1123_v8  ;;  %v440_v28 = vmax.f32 %v362_v20, 0.0  ;;  %v520_v8 = vld [vmem:[#allocation8 + $0x268] sm:$0xff]  ;;  %v1145_v20 = vpack.c.bf16 %v538_v13, %v537_v12 }
 0x136   :  { %1156 = vmatpush3.bf16.msra.mxu1 %v1155_v10  ;;  %1126 = vmatprep.subr.bf16.mxu0 %v1125_v0  ;;  %v442_v34 = vmax.f32 %v433_v24, 0.0  ;;  %v551_v10 = vld [vmem:[#allocation8 + $0x360] sm:$0xff]  ;;  %v1173_v0 = vpack.c.bf16 %v568_v1, %v567_v63  ;;  %v1143_v18 = vpack.c.bf16 %v520_v8, %v519_v7  ;;  %v553_v24 = vld [vmem:[#allocation8 + $0x370] sm:$0xff] }
 0x137   :  { %1158 = vmatprep.subr.bf16.mxu1 %v1157_v16  ;;  %782 = vmatprep.mubr.f32.mxu0 %v440_v28  ;;  %v570_v16 = vld [vmem:[#allocation8 + $0x3f8] sm:$0xff]  ;;  %v1175_v25 = vpack.c.bf16 %v552_v11, %v551_v10  ;;  %v431_v28 = vadd.f32 %v1429_v15, %v134_v17  ;;  %v880_v15 = vld [vmem:[%s1456_s4] ss:$0 sm:$0xff] }
 0x138   :  { %852 = vmatprep.mubr.f32.mxu1 %v442_v34  ;;  %v1177_v23 = vpack.c.bf16 %v570_v16, %v569_v14 }
 0x139   :  { %1128 = vmatpush3.bf16.msra.mxu0 %v1127_v26  ;;  %v554_v26 = vld [vmem:[#allocation8 + $0x378] sm:$0xff]  ;;  %v441_v27 = vmax.f32 %v431_v28, 0.0 }
 0x13a   :  { %1160 = vmatpush3.bf16.msra.mxu1 %v1159_v29  ;;  %1130 = vmatprep.subr.bf16.mxu0 %v1129_v30  ;;  %v1147_v29 = vpack.c.bf16 %v522_v22, %v521_v21  ;;  %v360_v30 = vadd.f32 %v1427_v9, %v126_v19  ;;  %v1179_v31 = vpack.c.bf16 %v554_v26, %v553_v24 }
 0x13b   :  { %1162 = vmatprep.subr.bf16.mxu1 %v1161_v35 }
 0x13c   :  { %v439_v32 = vmax.f32 %v360_v30, 0.0 }
 0x13d   :  { %1132 = vmatpush3.bf16.msra.mxu0 %v1131_v41 }
 0x13e   :  { %1164 = vmatpush3.bf16.msra.mxu1 %v1163_v42  ;;  %1134 = vmatprep.subr.bf16.mxu0 %v1133_v43 }
 0x13f   :  { %1166 = vmatprep.subr.bf16.mxu1 %v1165_v47 }
 0x141   :  { %1136 = vmatpush3.bf16.msra.mxu0 %v1135_v53 }
 0x142   :  { %1168 = vmatpush3.bf16.msra.mxu1 %v1167_v54  ;;  %1138 = vmatprep.subr.bf16.mxu0 %v1137_v55 }
 0x143   :  { %1170 = vmatprep.subr.bf16.mxu1 %v1169_v59 }
 0x145   :  { %1140 = vmatpush3.bf16.msra.mxu0 %v1139_v2 }
 0x146   :  { %1172 = vmatpush3.bf16.msra.mxu1 %v1171_v4  ;;  %1142 = vmatprep.subr.bf16.mxu0 %v1141_v6 }
 0x147   :  { %1174 = vmatprep.subr.bf16.mxu1 %v1173_v0 }
 0x149   :  { %1144 = vmatpush3.bf16.msra.mxu0 %v1143_v18 }
 0x14a   :  { %1176 = vmatpush3.bf16.msra.mxu1 %v1175_v25  ;;  %1146 = vmatprep.subr.bf16.mxu0 %v1145_v20 }
 0x14b   :  { %1178 = vmatprep.subr.bf16.mxu1 %v1177_v23 }
 0x14d   :  { %1148 = vmatpush3.bf16.msra.mxu0 %v1147_v29 }
 0x14e   :  { %1180 = vmatpush3.bf16.msra.mxu1 %v1179_v31 }
 0x150   :  { %783 = vmatmul.mubr.f32.vlgmr.msra.gmra.mrb[6].mxu0 %v439_v32 }
 0x151   :  { %853 = vmatmul.mubr.f32.vlgmr.msra.gmra.mrb[6].mxu1 %v441_v27 }
 0x203   :  { %v913_v33 = vpop.f32.mrb[4].mxu0 }
 0x204   :  { %v948_v34 = vpop.f32.mrb[4].mxu1  ;;  %v914_v35 = vpop.f32.mrb[5].mxu0 }
 0x205   :  { %v915_v36 = vadd.f32 %v914_v35, %v913_v33  ;;  %v949_v37 = vpop.f32.mrb[5].mxu1 }
 0x206   :  { %v950_v9 = vadd.f32 %v949_v37, %v948_v34 }
 0x207   :  { %v645_v38 = vadd.f32 %v915_v36, %v880_v15 }
 0x209   :  { %v715_v39 = vadd.f32 %v950_v9, %v645_v38 }
 0x223   :  { %v983_v40 = vpop.f32.mrb[6].mxu0 }
 0x224   :  { %v1018_v41 = vpop.f32.mrb[6].mxu1  ;;  %v984_v42 = vpop.f32.mrb[7].mxu0 }
 0x225   :  { %v985_v43 = vadd.f32 %v984_v42, %v983_v40  ;;  %v1019_v44 = vpop.f32.mrb[7].mxu1 }
 0x226   :  { %v1020_v45 = vadd.f32 %v1019_v44, %v1018_v41 }
 0x227   :  { %v785_v46 = vadd.f32 %v985_v43, %v715_v39 }
 0x229   :  { %v855_v47 = vadd.f32 %v1020_v45, %v785_v46 }
 0x22b   :  { %858 = vst [vmem:[#allocation10] sm:$0xff] %v855_v47 }
 0x22c   :  { %1290 = shalt.err (!%p1287_p8)
}
 0x22d   :  { %s1291_s21 = scalar_lea.hbm %s1457_s5, 128 }
 0x22e   :  { %p1292_p9 = scmp.ne.s32.totalorder %s1457_s5, %s1291_s21  ;;  %p1295_p10 = scmp.lt.u32.totalorder %s1291_s21, %s1457_s5 }
 0x230   :  { %p1297_p11 = pnand %p1295_p10, %p1292_p9 }
 0x232   :  { %1300 = shalt.err (!%p1297_p11)
}
 0x233   :  { %868 = dma.vmem_to_hbm [thread:$0]  %s866_s18, 128, %s1457_s5, [#allocation4]  }
 0x234   :  { %1307 = dma.done.wait [#allocation4], 128  }
 0x235   :  { %1308 = vsyncadd [#allocation4], 4294967168 }
 0x236   :  { %872 = vsyncpa [#allocation3], 1 }
 0x237   :  { %873 = vsyncpa [#allocation6], 1 }
 0x238   :  { %874 = vsyncpa [#allocation9], 1 }
 0x239   :  { %875 = vsyncpa [#allocation4], 1 }

</bundles_post_ra>
